<compile_context>
chip_gen: v6e
topology: v6e:2x2x1
jax: 0.10.0
libtpu: 0.0.40
codegen_flags: <defaults>
</compile_context>

<pallas_src>
import functools
import math

import jax
import jax.numpy as jnp
from jax import lax
from jax.experimental import pallas as pl
from jax.experimental.pallas import tpu as pltpu

# ----------------------------------------------------------------------------
# Model hyper-parameters (UnetMW.__init__ -> UNetModel(...))
# ----------------------------------------------------------------------------
MODEL_CHANNELS = 128
CHANNEL_MULT = (1, 2, 3, 4, 5)
NUM_RES_BLOCKS = 2
ATTN_DS = (8, 16)                 # attention_resolutions (downsample factors)
NUM_HEAD_CHANNELS = 32
IN_CHANNELS = 6
OUT_CHANNELS = 3
TIME_EMBED_DIM = 4 * MODEL_CHANNELS      # 512
TASK_TOKEN_CHANNELS = 512
GN_GROUPS = 32
GN_EPS = 1e-5

_SMALL_M = 64                     # GEMMs with fewer rows go through plain XLA
_VMEM_LIMIT = 32 * 1024 * 1024


def _round_up(x, m):
    return ((x + m - 1) // m) * m


def _largest_tile(padded, cap):
    """Largest multiple of 128 that divides `padded` (itself a multiple of 128), <= cap."""
    units = padded // 128
    best = 1
    for t in range(1, min(units, cap // 128) + 1):
        if units % t == 0:
            best = t
    return best * 128


# ----------------------------------------------------------------------------
# Pallas kernel 1: bf16 tiled matmul, K-accumulation, bias fused in epilogue
# ----------------------------------------------------------------------------
def _mm_bias_kernel(a_ref, b_ref, bias_ref, o_ref, acc_ref):
    @pl.when(pl.program_id(2) == 0)
    def _init():
        acc_ref[...] = jnp.zeros_like(acc_ref)

    acc_ref[...] += jnp.dot(a_ref[...], b_ref[...],
                            preferred_element_type=jnp.float32)

    @pl.when(pl.program_id(2) == pl.num_programs(2) - 1)
    def _done():
        o_ref[...] = (acc_ref[...] + bias_ref[...]).astype(o_ref.dtype)


@functools.lru_cache(maxsize=None)
def _matmul_call(M, K, N):
    Kp = _round_up(K, 128)
    Np = _round_up(N, 128)
    bk = _largest_tile(Kp, 2048)
    bn = _largest_tile(Np, 1024)
    Mp = _round_up(M, 16)
    if Mp > 256:
        bm = 256
        Mp = _round_up(M, 256)
    else:
        bm = Mp
    call = pl.pallas_call(
        _mm_bias_kernel,
        out_shape=jax.ShapeDtypeStruct((Mp, Np), jnp.bfloat16),
        grid_spec=pltpu.PrefetchScalarGridSpec(
            num_scalar_prefetch=0,
            grid=(Mp // bm, Np // bn, Kp // bk),
            in_specs=[pl.BlockSpec((bm, bk), lambda i, j, k: (i, k)),
                      pl.BlockSpec((bk, bn), lambda i, j, k: (k, j)),
                      pl.BlockSpec((1, bn), lambda i, j, k: (0, j))],
            out_specs=pl.BlockSpec((bm, bn), lambda i, j, k: (i, j)),
            scratch_shapes=[pltpu.VMEM((bm, bn), jnp.float32)]),
        compiler_params=pltpu.CompilerParams(
            dimension_semantics=("parallel", "parallel", "arbitrary"),
            vmem_limit_bytes=_VMEM_LIMIT),
    )
    return call, Mp, Kp, Np


def matmul_bias(a, w, bias):
    """a:[M,K] @ w:[K,N] + bias:[N] -> bf16 [M,N] (bf16 MXU, f32 accumulation)."""
    M, K = a.shape
    K2, N = w.shape
    assert K == K2
    a = a.astype(jnp.bfloat16)
    w = w.astype(jnp.bfloat16)
    bias = bias.astype(jnp.float32)
    if M < _SMALL_M:
        # tiny GEMMs: plain XLA dot under the top-level jit (per perf review)
        y = jnp.dot(a, w, preferred_element_type=jnp.float32) + bias[None, :]
        return y.astype(jnp.bfloat16)
    call, Mp, Kp, Np = _matmul_call(M, K, N)
    a_p = jnp.pad(a, ((0, Mp - M), (0, Kp - K)))
    w_p = jnp.pad(w, ((0, Kp - K), (0, Np - N)))
    b_p = jnp.pad(bias, (0, Np - N)).reshape(1, Np)
    return call(a_p, w_p, b_p)[:M, :N]


# ----------------------------------------------------------------------------
# Pallas kernel 2: GroupNorm (optionally fused SiLU), channels-last
# ----------------------------------------------------------------------------
def _make_gn_kernel(S, C, silu):
    G = GN_GROUPS
    Cg = C // G
    inv_n = 1.0 / float(S * Cg)

    def kernel(x_ref, g_ref, b_ref, o_ref):
        x = x_ref[0].astype(jnp.float32)                       # (S, C)
        # channel->group one-hot (C, G) and group->channel one-hot (G, C)
        c_i = lax.broadcasted_iota(jnp.int32, (C, G), 0)
        g_i = lax.broadcasted_iota(jnp.int32, (C, G), 1)
        c2g = ((c_i >= g_i * Cg) & (c_i < (g_i + 1) * Cg)).astype(jnp.float32)
        g_j = lax.broadcasted_iota(jnp.int32, (G, C), 0)
        c_j = lax.broadcasted_iota(jnp.int32, (G, C), 1)
        g2c = ((c_j >= g_j * Cg) & (c_j < (g_j + 1) * Cg)).astype(jnp.float32)

        ssum = jnp.sum(x, axis=0, keepdims=True)               # (1, C)
        sqsum = jnp.sum(x * x, axis=0, keepdims=True)          # (1, C)
        mean_g = jnp.dot(ssum, c2g, preferred_element_type=jnp.float32) * inv_n
        msq_g = jnp.dot(sqsum, c2g, preferred_element_type=jnp.float32) * inv_n
        var_g = jnp.maximum(msq_g - mean_g * mean_g, 0.0)
        rstd_g = lax.rsqrt(var_g + GN_EPS)
        mean_c = jnp.dot(mean_g, g2c, preferred_element_type=jnp.float32)   # (1, C)
        rstd_c = jnp.dot(rstd_g, g2c, preferred_element_type=jnp.float32)   # (1, C)

        y = (x - mean_c) * rstd_c * g_ref[...] + b_ref[...]
        if silu:
            y = y * jax.nn.sigmoid(y)
        o_ref[0] = y.astype(o_ref.dtype)

    return kernel


@functools.lru_cache(maxsize=None)
def _gn_call(B, S, C, silu):
    return pl.pallas_call(
        _make_gn_kernel(S, C, silu),
        out_shape=jax.ShapeDtypeStruct((B, S, C), jnp.bfloat16),
        grid_spec=pltpu.PrefetchScalarGridSpec(
            num_scalar_prefetch=0,
            grid=(B,),
            in_specs=[pl.BlockSpec((1, S, C), lambda b: (b, 0, 0)),
                      pl.BlockSpec((1, C), lambda b: (0, 0)),
                      pl.BlockSpec((1, C), lambda b: (0, 0))],
            out_specs=pl.BlockSpec((1, S, C), lambda b: (b, 0, 0))),
        compiler_params=pltpu.CompilerParams(
            dimension_semantics=("parallel",),
            vmem_limit_bytes=_VMEM_LIMIT),
    )


def group_norm(x, gamma, beta, silu=False):
    """x: channels-last (B, ..., C)."""
    B, C = x.shape[0], x.shape[-1]
    S = math.prod(x.shape[1:-1])
    y = _gn_call(B, S, C, bool(silu))(
        x.reshape(B, S, C),
        gamma.astype(jnp.float32).reshape(1, C),
        beta.astype(jnp.float32).reshape(1, C))
    return y.reshape(x.shape)


# ----------------------------------------------------------------------------
# Pallas kernel 3: softmax attention, all heads of one batch per grid step,
# scale folded inside, bf16 matmuls / f32 softmax
# ----------------------------------------------------------------------------
def _make_attn_kernel(scale):
    def kernel(q_ref, k_ref, v_ref, o_ref):
        q = q_ref[0]                                   # (H, Tq, d) bf16
        k = k_ref[0]                                   # (H, Tk, d) bf16
        v = v_ref[0]
        s = jnp.einsum('hqd,hkd->hqk', q, k,
                       preferred_element_type=jnp.float32) * scale
        s = s - jnp.max(s, axis=-1, keepdims=True)
        p = jnp.exp(s)
        p = p * pl.reciprocal(jnp.sum(p, axis=-1, keepdims=True), approx=True)
        o = jnp.einsum('hqk,hkd->hqd', p.astype(v.dtype), v,
                       preferred_element_type=jnp.float32)
        o_ref[0] = o.astype(o_ref.dtype)
    return kernel


@functools.lru_cache(maxsize=None)
def _attn_call(B, H, Tq, Tk, d):
    # TODO(synk): for long sequences this holds the full (H, Tq, Tk) score block
    # per batch in VMEM; a flash-style Tk-tiled online-softmax variant is needed
    # for large images (v7x VMEM), not at this toy size.
    return pl.pallas_call(
        _make_attn_kernel(1.0 / math.sqrt(d)),
        out_shape=jax.ShapeDtypeStruct((B, H, Tq, d), jnp.bfloat16),
        grid_spec=pltpu.PrefetchScalarGridSpec(
            num_scalar_prefetch=0,
            grid=(B,),
            in_specs=[pl.BlockSpec((1, H, Tq, d), lambda b: (b, 0, 0, 0)),
                      pl.BlockSpec((1, H, Tk, d), lambda b: (b, 0, 0, 0)),
                      pl.BlockSpec((1, H, Tk, d), lambda b: (b, 0, 0, 0))],
            out_specs=pl.BlockSpec((1, H, Tq, d), lambda b: (b, 0, 0, 0))),
        compiler_params=pltpu.CompilerParams(
            dimension_semantics=("parallel",),
            vmem_limit_bytes=_VMEM_LIMIT),
    )


# ----------------------------------------------------------------------------
# Conv3d (channels-last) = shifted-slice im2col (fused by XLA) + Pallas matmul
# ----------------------------------------------------------------------------
def _extract_patches3(x, stride):
    """x: (B, F, H, W, C) -> (B, Do, Ho, Wo, 27*C); tap order (kd, kh, kw, c)."""
    B, F, H, W, C = x.shape
    sd, sh, sw = stride
    xp = jnp.pad(x, ((0, 0), (1, 1), (1, 1), (1, 1), (0, 0)))
    Do = (F + 2 - 3) // sd + 1
    Ho = (H + 2 - 3) // sh + 1
    Wo = (W + 2 - 3) // sw + 1
    taps = []
    for dz in range(3):
        for dy in range(3):
            for dx in range(3):
                taps.append(xp[:, dz:dz + (Do - 1) * sd + 1:sd,
                               dy:dy + (Ho - 1) * sh + 1:sh,
                               dx:dx + (Wo - 1) * sw + 1:sw, :])
    return jnp.concatenate(taps, axis=-1), (Do, Ho, Wo)


def conv3d(x, p, stride=(1, 1, 1)):
    """Channels-last Conv3d, kernel 1x1x1 or 3x3x3 ('same' padding)."""
    w, b = p['w'], p['b']                 # w: (kd*kh*kw*Cin, Cout) bf16
    B, Cin = x.shape[0], x.shape[-1]
    K, Cout = w.shape
    if K == Cin:                          # 1x1x1 conv
        Do, Ho, Wo = x.shape[1], x.shape[2], x.shape[3]
        cols = x.reshape(-1, Cin)
    else:                                 # 3x3x3 conv
        # TODO(synk): implicit-GEMM conv kernel would avoid materializing the
        # 27x patch tensor in HBM; here the bf16 patch build stays inside the jit.
        cols, (Do, Ho, Wo) = _extract_patches3(x, stride)
        cols = cols.reshape(-1, K)
    y = matmul_bias(cols, w, b)
    return y.reshape(B, Do, Ho, Wo, Cout)


def upsample2x(x):
    # dims=3 Upsample: nearest, scale (1, 2, 2) — frame dim untouched
    x = jnp.repeat(x, 2, axis=2)
    x = jnp.repeat(x, 2, axis=3)
    return x


# ----------------------------------------------------------------------------
# UNet building blocks (channels-last)
# ----------------------------------------------------------------------------
def res_block(p, x, emb):
    h = group_norm(x, p['norm1_g'], p['norm1_b'], silu=True)
    h = conv3d(h, p['conv1'])
    emb_out = jnp.dot(jax.nn.silu(emb), p['emb']['w']) + p['emb']['b']   # (B, Cout)
    h = h + emb_out[:, None, None, None, :].astype(h.dtype)
    h = group_norm(h, p['norm2_g'], p['norm2_b'], silu=True)
    h = conv3d(h, p['conv2'])                                            # dropout=0
    if 'skip' in p:
        x = conv3d(x, p['skip'])
    return x + h


def attn_block(p, x, enc):
    B, Fr, H, W, C = x.shape
    T = Fr * H * W
    d = NUM_HEAD_CHANNELS
    heads = C // d

    xf = x.reshape(B, T, C)
    xn = group_norm(xf, p['norm_g'], p['norm_b'], silu=False)

    qkv = matmul_bias(xn.reshape(B * T, C), p['qkv_w'], p['qkv_b'])
    qkv = qkv.reshape(B, T, 3, heads, d)
    q = qkv[:, :, 0].transpose(0, 2, 1, 3)         # (B, heads, T, d)
    k = qkv[:, :, 1].transpose(0, 2, 1, 3)
    v = qkv[:, :, 2].transpose(0, 2, 1, 3)
    Tk = T

    if enc is not None:
        # GLIDE-style cross-attention to projected task tokens.
        L = enc.shape[1]
        ekv = matmul_bias(enc.reshape(B * L, enc.shape[-1]),
                          p['enc_kv_w'], p['enc_kv_b'])
        ekv = ekv.reshape(B, L, 2, heads, d)
        ek = ekv[:, :, 0].transpose(0, 2, 1, 3)
        ev = ekv[:, :, 1].transpose(0, 2, 1, 3)
        k = jnp.concatenate([ek, k], axis=2)
        v = jnp.concatenate([ev, v], axis=2)
        Tk = T + L

    a = _attn_call(B, heads, T, Tk, d)(q, k, v)    # (B, heads, T, d)
    a = a.transpose(0, 2, 1, 3).reshape(B * T, C)
    h = matmul_bias(a, p['proj_w'], p['proj_b']).reshape(B, T, C)
    return (xf + h).reshape(x.shape)


def apply_layers(layers, h, emb, enc):
    for layer in layers:
        (kind, p), = layer.items()
        if kind == 'conv':
            h = conv3d(h, p)
        elif kind == 'res':
            h = res_block(p, h, emb)
        elif kind == 'attn':
            h = attn_block(p, h, enc)
        elif kind == 'down':
            h = conv3d(h, p, stride=(1, 2, 2))
        elif kind == 'up':
            h = conv3d(upsample2x(h), p)
        else:
            raise ValueError(kind)
    return h


# ----------------------------------------------------------------------------
# Deterministic parameter construction (weights stored in matmul layout, bf16)
# ----------------------------------------------------------------------------
class ParamInit:
    def __init__(self, seed=0):
        self.key = jax.random.PRNGKey(seed)
        self.count = 0

    def normal(self, shape, std):
        self.count += 1
        k = jax.random.fold_in(self.key, self.count)
        return std * jax.random.normal(k, shape, dtype=jnp.float32)


def conv_param(init, cin, cout, ksize):
    fan_in = cin * ksize ** 3
    w = init.normal((ksize, ksize, ksize, cin, cout), 1.0 / math.sqrt(fan_in))
    return {'w': w.reshape(ksize ** 3 * cin, cout).astype(jnp.bfloat16),
            'b': jnp.zeros((cout,), jnp.float32)}


def linear_param(init, fin, fout):
    # stored pre-transposed: (in, out)
    return {'w': init.normal((fin, fout), 1.0 / math.sqrt(fin)),
            'b': jnp.zeros((fout,), jnp.float32)}


def res_param(init, cin, cout):
    p = {'norm1_g': jnp.ones((cin,), jnp.float32),
         'norm1_b': jnp.zeros((cin,), jnp.float32),
         'conv1': conv_param(init, cin, cout, 3),
         'emb': linear_param(init, TIME_EMBED_DIM, cout),
         'norm2_g': jnp.ones((cout,), jnp.float32),
         'norm2_b': jnp.zeros((cout,), jnp.float32),
         'conv2': conv_param(init, cout, cout, 3)}
    if cin != cout:
        p['skip'] = conv_param(init, cin, cout, 1)
    return p


def attn_param(init, c):
    return {'norm_g': jnp.ones((c,), jnp.float32),
            'norm_b': jnp.zeros((c,), jnp.float32),
            'qkv_w': init.normal((c, 3 * c), 1.0 / math.sqrt(c)).astype(jnp.bfloat16),
            'qkv_b': jnp.zeros((3 * c,), jnp.float32),
            'enc_kv_w': init.normal((TASK_TOKEN_CHANNELS, 2 * c),
                                    1.0 / math.sqrt(TASK_TOKEN_CHANNELS)).astype(jnp.bfloat16),
            'enc_kv_b': jnp.zeros((2 * c,), jnp.float32),
            'proj_w': init.normal((c, c), 1.0 / math.sqrt(c)).astype(jnp.bfloat16),
            'proj_b': jnp.zeros((c,), jnp.float32)}


def build_params(seed=0):
    init = ParamInit(seed)
    p = {'time_w1': linear_param(init, MODEL_CHANNELS, TIME_EMBED_DIM),
         'time_w2': linear_param(init, TIME_EMBED_DIM, TIME_EMBED_DIM),
         'task_proj': linear_param(init, TASK_TOKEN_CHANNELS, TASK_TOKEN_CHANNELS)}

    ch = MODEL_CHANNELS
    input_blocks = [[{'conv': conv_param(init, IN_CHANNELS, ch, 3)}]]
    input_block_chans = [ch]
    ds = 1
    for level, mult in enumerate(CHANNEL_MULT):
        for _ in range(NUM_RES_BLOCKS):
            out_ch = mult * MODEL_CHANNELS
            layers = [{'res': res_param(init, ch, out_ch)}]
            ch = out_ch
            if ds in ATTN_DS:
                layers.append({'attn': attn_param(init, ch)})
            input_blocks.append(layers)
            input_block_chans.append(ch)
        if level != len(CHANNEL_MULT) - 1:
            input_blocks.append([{'down': conv_param(init, ch, ch, 3)}])
            input_block_chans.append(ch)
            ds *= 2
    p['input_blocks'] = input_blocks

    p['middle'] = [{'res': res_param(init, ch, ch)},
                   {'attn': attn_param(init, ch)},
                   {'res': res_param(init, ch, ch)}]

    output_blocks = []
    for level, mult in reversed(list(enumerate(CHANNEL_MULT))):
        for i in range(NUM_RES_BLOCKS + 1):
            ich = input_block_chans.pop()
            out_ch = mult * MODEL_CHANNELS
            layers = [{'res': res_param(init, ch + ich, out_ch)}]
            ch = out_ch
            if ds in ATTN_DS:
                layers.append({'attn': attn_param(init, ch)})
            if level and i == NUM_RES_BLOCKS:
                layers.append({'up': conv_param(init, ch, ch, 3)})
                ds //= 2
            output_blocks.append(layers)
    p['output_blocks'] = output_blocks

    p['out_norm_g'] = jnp.ones((ch,), jnp.float32)
    p['out_norm_b'] = jnp.zeros((ch,), jnp.float32)
    p['out_conv'] = conv_param(init, ch, OUT_CHANNELS, 3)
    return p


# ----------------------------------------------------------------------------
# UNet forward + UnetMW wrapper (single top-level jit)
# ----------------------------------------------------------------------------
def timestep_embedding(t, dim, max_period=10000):
    half = dim // 2
    freqs = jnp.exp(-math.log(max_period)
                    * jnp.arange(half, dtype=jnp.float32) / half)
    args = t.astype(jnp.float32)[:, None] * freqs[None, :]
    return jnp.concatenate([jnp.cos(args), jnp.sin(args)], axis=-1)


def unet_forward(params, x, t, task_embed):
    # time embedding MLP: tiny (M=B), plain XLA under the top-level jit
    emb = timestep_embedding(t, MODEL_CHANNELS)
    emb = jnp.dot(emb, params['time_w1']['w']) + params['time_w1']['b']
    emb = jax.nn.silu(emb)
    emb = jnp.dot(emb, params['time_w2']['w']) + params['time_w2']['b']

    enc = None
    if task_embed is not None:
        # TODO(synk): the exact task-token conditioning of flowdiffusion.UNetModel is
        # not visible from the reference snippet; approximated GLIDE-style (projected
        # tokens as cross-attention K/V, mean token added to the timestep embedding).
        tok = jnp.dot(task_embed, params['task_proj']['w']) + params['task_proj']['b']
        emb = emb + jnp.mean(tok, axis=1)
        enc = tok.astype(jnp.bfloat16)                    # (B, L, 512)

    h = x.astype(jnp.bfloat16)                            # (B, F, H, W, 6) channels-last
    hs = []
    for layers in params['input_blocks']:
        h = apply_layers(layers, h, emb, enc)
        hs.append(h)
    h = apply_layers(params['middle'], h, emb, enc)
    for layers in params['output_blocks']:
        h = jnp.concatenate([h, hs.pop()], axis=-1)
        h = apply_layers(layers, h, emb, enc)

    h = group_norm(h, params['out_norm_g'], params['out_norm_b'], silu=True)
    return conv3d(h, params['out_conv'])                  # (B, F, H, W, 3)


def unet_mw_forward(params, x, t, task_embed=None):
    # UnetMW.forward, with the UNet running channels-last internally.
    B, C, H, W = x.shape
    f = C // 3 - 1
    x_frames = x[:, :-3].reshape(B, f, 3, H, W)                        # (B, f, 3, H, W)
    x_cond = jnp.broadcast_to(x[:, -3:][:, None], (B, f, 3, H, W))
    xin = jnp.concatenate([x_frames, x_cond], axis=2)                  # channels: [frame, cond]
    xin = xin.transpose(0, 1, 3, 4, 2)                                 # (B, F, H, W, 6)
    out = unet_forward(params, xin, t, task_embed)                     # (B, F, H, W, 3)
    out = out.transpose(0, 1, 4, 2, 3).reshape(B, f * 3, H, W)
    return out.astype(jnp.float32)


# ----------------------------------------------------------------------------
if __name__ == "__main__":
    # quick sanity check of the Pallas bf16 matmul (+ fused bias) kernel
    a = jax.random.normal(jax.random.PRNGKey(1), (200, 300), jnp.float32)
    w0 = jax.random.normal(jax.random.PRNGKey(2), (300, 192), jnp.float32)
    b0 = jax.random.normal(jax.random.PRNGKey(3), (192,), jnp.float32)
    ref = a @ w0 + b0[None, :]
    got = matmul_bias(a, w0, b0).astype(jnp.float32)
    rel = float(jnp.max(jnp.abs(got - ref)) / jnp.max(jnp.abs(ref)))
    assert rel < 3e-2, rel

    key = jax.random.PRNGKey(0)
    B, F, H, W = 2, 2, 16, 16          # small spatial shapes; frames f = 2
    L = 8                              # task-token sequence length
    kx, kt, ke = jax.random.split(key, 3)
    x = jax.random.normal(kx, (B, (F + 1) * 3, H, W), jnp.float32)     # [2, 9, 16, 16]
    t = jax.random.randint(kt, (B,), 0, 1000)
    task_embed = jax.random.normal(ke, (B, L, TASK_TOKEN_CHANNELS), jnp.float32)

    params = build_params(seed=0)
    fwd = jax.jit(unet_mw_forward)
    out = jax.block_until_ready(fwd(params, x, t, task_embed))

    assert out.shape == (B, F * 3, H, W)
    assert bool(jnp.all(jnp.isfinite(out)))
    print("KERNEL_OK")
</pallas_src>

<mosaic_0001>
module attributes {stable_mosaic.version = 11 : i64} {
  func.func @_mm_bias_kernel(%arg0: i32, %arg1: i32, %arg2: i32, %arg3: memref<208x384xbf16, #tpu.memory_space<vmem>>, %arg4: memref<384x256xbf16, #tpu.memory_space<vmem>>, %arg5: memref<1x256xf32, #tpu.memory_space<vmem>>, %arg6: memref<208x256xbf16, #tpu.memory_space<vmem>>, %arg7: memref<208x256xf32, #tpu.memory_space<vmem>>) attributes {dimension_semantics = [#tpu.dimension_semantics<parallel>, #tpu.dimension_semantics<parallel>, #tpu.dimension_semantics<arbitrary>], iteration_bounds = array<i64: 1, 1, 1>, scalar_prefetch = 0 : i64, scratch_operands = 1 : i64, tpu.core_type = #tpu.core_type<tc>, window_params = [{transform_indices = @transform_0, window_bounds = array<i64: 208, 384>}, {transform_indices = @transform_1, window_bounds = array<i64: 384, 256>}, {transform_indices = @transform_2, window_bounds = array<i64: 1, 256>}, {transform_indices = @transform_3, window_bounds = array<i64: 208, 256>}]} {
    %c0_i32 = arith.constant 0 : i32
    %0 = arith.cmpi eq, %arg2, %c0_i32 : i32
    %1 = arith.extui %0 : i1 to i32
    %c0_i32_0 = arith.constant 0 : i32
    %2 = arith.cmpi ne, %1, %c0_i32_0 : i32
    scf.if %2 {
      %cst_10 = arith.constant 0.000000e+00 : f32
      %12 = vector.broadcast %cst_10 : f32 to vector<208x256xf32>
      %c0_11 = arith.constant 0 : index
      %c0_12 = arith.constant 0 : index
      %13 = vector.load %arg7[%c0_11, %c0_12] : memref<208x256xf32, #tpu.memory_space<vmem>>, vector<208x256xf32>
      tpu.vector_store %arg7[%c0_11, %c0_12], %12 {strides = array<i32>} : memref<208x256xf32, #tpu.memory_space<vmem>>, vector<208x256xf32>,
    } else {
    }
    %c0 = arith.constant 0 : index
    %c0_1 = arith.constant 0 : index
    %3 = vector.load %arg7[%c0, %c0_1] : memref<208x256xf32, #tpu.memory_space<vmem>>, vector<208x256xf32>
    %c0_2 = arith.constant 0 : index
    %c0_3 = arith.constant 0 : index
    %4 = vector.load %arg3[%c0_2, %c0_3] : memref<208x384xbf16, #tpu.memory_space<vmem>>, vector<208x384xbf16>
    %c0_4 = arith.constant 0 : index
    %c0_5 = arith.constant 0 : index
    %5 = vector.load %arg4[%c0_4, %c0_5] : memref<384x256xbf16, #tpu.memory_space<vmem>>, vector<384x256xbf16>
    %cst = arith.constant dense<0.000000e+00> : vector<208x256xf32>
    %6 = tpu.matmul %4, %5, %cst {dimension_numbers = #tpu.dot_dimension_numbers<[1], [0], [0], [1], [0, 0, 1, 1], [], []>} : vector<208x384xbf16>, vector<384x256xbf16>, vector<208x256xf32> -> vector<208x256xf32>
    %7 = arith.addf %3, %6 : vector<208x256xf32>
    %c0_6 = arith.constant 0 : index
    %c0_7 = arith.constant 0 : index
    %8 = vector.load %arg7[%c0_6, %c0_7] : memref<208x256xf32, #tpu.memory_space<vmem>>, vector<208x256xf32>
    tpu.vector_store %arg7[%c0_6, %c0_7], %7 {strides = array<i32>} : memref<208x256xf32, #tpu.memory_space<vmem>>, vector<208x256xf32>,
    %c0_i32_8 = arith.constant 0 : i32
    %9 = arith.cmpi eq, %arg2, %c0_i32_8 : i32
    %10 = arith.extui %9 : i1 to i32
    %c0_i32_9 = arith.constant 0 : i32
    %11 = arith.cmpi ne, %10, %c0_i32_9 : i32
    scf.if %11 {
      %c0_10 = arith.constant 0 : index
      %c0_11 = arith.constant 0 : index
      %12 = vector.load %arg7[%c0_10, %c0_11] : memref<208x256xf32, #tpu.memory_space<vmem>>, vector<208x256xf32>
      %c0_12 = arith.constant 0 : index
      %c0_13 = arith.constant 0 : index
      %13 = vector.load %arg5[%c0_12, %c0_13] : memref<1x256xf32, #tpu.memory_space<vmem>>, vector<1x256xf32>
      %14 = vector.broadcast %13 : vector<1x256xf32> to vector<208x256xf32>
      %15 = arith.addf %12, %14 : vector<208x256xf32>
      %16 = arith.truncf %15 : vector<208x256xf32> to vector<208x256xbf16>
      %c0_14 = arith.constant 0 : index
      %c0_15 = arith.constant 0 : index
      %17 = vector.load %arg6[%c0_14, %c0_15] : memref<208x256xbf16, #tpu.memory_space<vmem>>, vector<208x256xbf16>
      tpu.vector_store %arg6[%c0_14, %c0_15], %16 {strides = array<i32>} : memref<208x256xbf16, #tpu.memory_space<vmem>>, vector<208x256xbf16>,
    } else {
    }
    return
  }
  func.func @transform_0(%arg0: i32, %arg1: i32, %arg2: i32) -> (i32, i32) {
    %c0_i32 = arith.constant 0 : i32
    return %arg0, %arg2 : i32, i32
  }
  func.func @transform_1(%arg0: i32, %arg1: i32, %arg2: i32) -> (i32, i32) {
    %c0_i32 = arith.constant 0 : i32
    return %arg2, %arg1 : i32, i32
  }
  func.func @transform_2(%arg0: i32, %arg1: i32, %arg2: i32) -> (i32, i32) {
    %c0_i32 = arith.constant 0 : i32
    %c0_i32_0 = arith.constant 0 : i32
    return %c0_i32, %arg1 : i32, i32
  }
  func.func @transform_3(%arg0: i32, %arg1: i32, %arg2: i32) -> (i32, i32) {
    %c0_i32 = arith.constant 0 : i32
    return %arg0, %arg1 : i32, i32
  }
}

</mosaic_0001>

<bundles_post_ra>
// kernel: tpu_custom_call.1
= control target key start
LH: loop header
LB: loop body
LE: loop exit
PB: predicated region body
PF: predicated region fallthrough
CT: control target
= control target key end

     0   :  { %8 = vsyncpa [#allocation4], 0  ;;  %s1901_s0 = inlined_call_operand.hbm [shape: bf16[208,384], index: 0, kind: input, shape index: {}]   ;;  %s1902_s1 = inlined_call_operand.hbm [shape: bf16[384,256], index: 1, kind: input, shape index: {}]   ;;  %s1903_s2 = inlined_call_operand.vmem [shape: f32[1,256], index: 2, kind: input, shape index: {}]   ;;  %s1904_s3 = inlined_call_operand.hbm [shape: bf16[208,256], index: 3, kind: output, shape index: {}]  }
   0x1   :  { %9 = vsyncpa [#allocation7], 0 }
   0x2   :  { %10 = vsyncpa [#allocation5], 0  ;;  %s1786_s12 = smov [#allocation3]  }
   0x3   :  { %s16_s13 = sshll.u32 %s1786_s12, 4  ;;  %s17_s13 = int_to_ptr.vmem [resolvable:$true] %s16_s13 }
   0x4   :  { %s1728_s14 = scalar_lea.vmem %s17_s13, 4992  ;;  %p1733_p1 = scmp.lt.s32.totalorder %s17_s13, %s17_s13 }
   0x5   :  { %p1729_p0 = scmp.ne.s32.totalorder %s17_s13, %s1728_s14  ;;  %p1734_p2 = scmp.lt.s32.totalorder %s1728_s14, %s1728_s14 }
   0x7   :  { %p1735_p3 = por %p1734_p2, %p1733_p1 }
   0x9   :  { %p1736_p4 = pnand %p1735_p3, %p1729_p0 }
   0xb   :  { %1739 = shalt.err (!%p1736_p4)
}
   0xc   :  { %s1787_s15 = smov 192   ;;  %s1788_s16 = smov 12  }
   0xd   :  { %22 = dma.hbm_to_vmem [thread:$0]  %s1901_s0, 4992, %s17_s13, [#allocation4], %s1787_s15, %s1787_s15, %s1788_s16  }
   0xe   :  { %s1789_s19 = smov [#allocation6]  }
   0xf   :  { %s28_s20 = sshll.u32 %s1789_s19, 4  ;;  %s29_s20 = int_to_ptr.vmem [resolvable:$true] %s28_s20 }
  0x10   :  { %s1748_s21 = scalar_lea.vmem %s29_s20, 6144  ;;  %p1753_p6 = scmp.lt.s32.totalorder %s29_s20, %s29_s20 }
  0x11   :  { %p1749_p5 = scmp.ne.s32.totalorder %s29_s20, %s1748_s21  ;;  %p1754_p7 = scmp.lt.s32.totalorder %s1748_s21, %s1748_s21 }
  0x13   :  { %p1755_p8 = por %p1754_p7, %p1753_p6 }
  0x15   :  { %p1756_p9 = pnand %p1755_p8, %p1749_p5 }
  0x17   :  { %1759 = shalt.err (!%p1756_p9)
}
  0x18   :  { %s1790_s22 = smov 128   ;;  %s1791_s23 = smov 8  }
  0x19   :  { %34 = dma.hbm_to_vmem [thread:$0]  %s1902_s1, 6144, %s29_s20, [#allocation7], %s1790_s22, %s1790_s22, %s1791_s23  }
  0x1a   :  { %1780 = dma.done.wait [#allocation4], 4992  }
  0x1b   :  { %1781 = vsyncadd [#allocation4], 4294962304 }
  0x1c   :  { %1782 = dma.done.wait [#allocation7], 6144  }
  0x1d   :  { %1783 = vsyncadd [#allocation7], 4294961152  ;;  %v1792_v0 = vmov 0   ;;  %v1596_v1 = vld [vmem:[#allocation6 + $0x74] ss:$8 sps:$4 sm:$0xff]  }
  0x1e   :  { %895 = vmatprep.mubr.bf16.mxu1 %v1792_v0  ;;  %v1598_v2 = vld [vmem:[#allocation6 + $0x70] ss:$8 sps:$4 sm:$0xff]   ;;  %700 = vmatprep.subr.bf16.mxu0 %v1596_v1  ;;  %v1599_v3 = vld [vmem:[#allocation6 + $0x64] ss:$8 sps:$4 sm:$0xff]   ;;  %v1601_v4 = vld [vmem:[#allocation6 + $0x60] ss:$8 sps:$4 sm:$0xff]  }
  0x1f   :  { %701 = vmatpush1.bf16.msra.mxu0 %v1598_v2  ;;  %v1602_v5 = vld [vmem:[#allocation6 + $0x54] ss:$8 sps:$4 sm:$0xff]   ;;  %v1604_v6 = vld [vmem:[#allocation6 + $0x50] ss:$8 sps:$4 sm:$0xff]   ;;  %v1605_v7 = vld [vmem:[#allocation6 + $0x44] ss:$8 sps:$4 sm:$0xff]  }
  0x20   :  { %702 = vmatprep.subr.bf16.mxu0 %v1599_v3  ;;  %v1617_v8 = vld [vmem:[#allocation6 + $0x174] ss:$8 sps:$4 sm:$0xff]   ;;  %v1619_v9 = vld [vmem:[#allocation6 + $0x170] ss:$8 sps:$4 sm:$0xff]   ;;  %v1607_v10 = vld [vmem:[#allocation6 + $0x40] ss:$8 sps:$4 sm:$0xff]  }
  0x21   :  { %v1608_v11 = vld [vmem:[#allocation6 + $0x34] ss:$8 sps:$4 sm:$0xff]   ;;  %863 = vmatprep.subr.bf16.mxu1 %v1617_v8  ;;  %v1623_v12 = vld [vmem:[#allocation6 + $0x164] ss:$8 sps:$4 sm:$0xff]   ;;  %v1625_v13 = vld [vmem:[#allocation6 + $0x160] ss:$8 sps:$4 sm:$0xff]  }
  0x22   :  { %864 = vmatpush1.bf16.msra.mxu1 %v1619_v9  ;;  %v1610_v14 = vld [vmem:[#allocation6 + $0x30] ss:$8 sps:$4 sm:$0xff]   ;;  %v1629_v15 = vld [vmem:[#allocation6 + $0x154] ss:$8 sps:$4 sm:$0xff]   ;;  %v1611_v16 = vld [vmem:[#allocation6 + $0x24] ss:$8 sps:$4 sm:$0xff]  }
  0x23   :  { %703 = vmatpush1.bf16.msra.mxu0 %v1601_v4  ;;  %865 = vmatprep.subr.bf16.mxu1 %v1623_v12  ;;  %v1631_v17 = vld [vmem:[#allocation6 + $0x150] ss:$8 sps:$4 sm:$0xff]   ;;  %v1635_v18 = vld [vmem:[#allocation6 + $0x144] ss:$8 sps:$4 sm:$0xff]   ;;  %v1613_v19 = vld [vmem:[#allocation6 + $0x20] ss:$8 sps:$4 sm:$0xff]  }
  0x24   :  { %704 = vmatprep.subr.bf16.mxu0 %v1602_v5  ;;  %v1614_v20 = vld [vmem:[#allocation6 + $0x14] ss:$8 sps:$4 sm:$0xff]   ;;  %v1637_v21 = vld [vmem:[#allocation6 + $0x140] ss:$8 sps:$4 sm:$0xff]   ;;  %v1616_v23 = vld [vmem:[#allocation6 + $0x10] ss:$8 sps:$4 sm:$0xff]  }
  0x25   :  { %v1641_v22 = vld [vmem:[#allocation6 + $0x134] ss:$8 sps:$4 sm:$0xff]   ;;  %v1620_v24 = vld [vmem:[#allocation6 + $0x4] ss:$8 sps:$4 sm:$0xff]   ;;  %v1643_v25 = vld [vmem:[#allocation6 + $0x130] ss:$8 sps:$4 sm:$0xff]  }
  0x26   :  { %866 = vmatpush1.bf16.msra.mxu1 %v1625_v13  ;;  %v1647_v26 = vld [vmem:[#allocation6 + $0x124] ss:$8 sps:$4 sm:$0xff]   ;;  %v1622_v27 = vld [vmem:[#allocation6] ss:$8 sps:$4 sm:$0xff]   ;;  %v1626_v28 = vld [vmem:[#allocation6 + $0xf4] ss:$8 sps:$4 sm:$0xff]  }
  0x27   :  { %705 = vmatpush1.bf16.msra.mxu0 %v1604_v6  ;;  %867 = vmatprep.subr.bf16.mxu1 %v1629_v15  ;;  %v1649_v29 = vld [vmem:[#allocation6 + $0x120] ss:$8 sps:$4 sm:$0xff]   ;;  %v1653_v30 = vld [vmem:[#allocation6 + $0x114] ss:$8 sps:$4 sm:$0xff]   ;;  %v1628_v31 = vld [vmem:[#allocation6 + $0xf0] ss:$8 sps:$4 sm:$0xff]  }
  0x28   :  { %706 = vmatprep.subr.bf16.mxu0 %v1605_v7  ;;  %v1632_v32 = vld [vmem:[#allocation6 + $0xe4] ss:$8 sps:$4 sm:$0xff]   ;;  %v1655_v33 = vld [vmem:[#allocation6 + $0x110] ss:$8 sps:$4 sm:$0xff]   ;;  %v1634_v36 = vld [vmem:[#allocation6 + $0xe0] ss:$8 sps:$4 sm:$0xff]  }
  0x29   :  { %v1659_v34 = vld [vmem:[#allocation6 + $0x104] ss:$8 sps:$4 sm:$0xff]   ;;  %v1638_v37 = vld [vmem:[#allocation6 + $0xd4] ss:$8 sps:$4 sm:$0xff]   ;;  %v1661_v38 = vld [vmem:[#allocation6 + $0x100] ss:$8 sps:$4 sm:$0xff]  }
  0x2a   :  { %868 = vmatpush1.bf16.msra.mxu1 %v1631_v17  ;;  %v1671_v35 = vld [vmem:[#allocation3 + $0x4] ss:$12 sps:$4 sm:$0xff]   ;;  %v1665_v41 = vld [vmem:[#allocation3 + $0x8] ss:$12 sps:$4 sm:$0xff]   ;;  %v1646_v42 = vld [vmem:[#allocation6 + $0xc0] ss:$8 sps:$4 sm:$0xff]  }
  0x2b   :  { %707 = vmatpush1.bf16.msra.mxu0 %v1607_v10  ;;  %869 = vmatprep.subr.bf16.mxu1 %v1635_v18  ;;  %v1640_v39 = vld [vmem:[#allocation6 + $0xd0] ss:$8 sps:$4 sm:$0xff]   ;;  %v1644_v40 = vld [vmem:[#allocation6 + $0xc4] ss:$8 sps:$4 sm:$0xff]   ;;  %v1650_v43 = vld [vmem:[#allocation6 + $0xb4] ss:$8 sps:$4 sm:$0xff]  }
  0x2c   :  { %708 = vmatprep.subr.bf16.mxu0 %v1608_v11  ;;  %732 = vmatprep.mubr.bf16.mxu0 %v1671_v35  ;;  %v1652_v44 = vld [vmem:[#allocation6 + $0xb0] ss:$8 sps:$4 sm:$0xff]   ;;  %v1656_v45 = vld [vmem:[#allocation6 + $0xa4] ss:$8 sps:$4 sm:$0xff]   ;;  %v1672_v46 = vld [vmem:[#allocation3 + $0x20] ss:$12 sps:$4 sm:$0xff]  }
  0x2d   :  { %v1658_v47 = vld [vmem:[#allocation6 + $0xa0] ss:$8 sps:$4 sm:$0xff]   ;;  %v1662_v48 = vld [vmem:[#allocation6 + $0x94] ss:$8 sps:$4 sm:$0xff]   ;;  %v1664_v49 = vld [vmem:[#allocation6 + $0x90] ss:$8 sps:$4 sm:$0xff]  }
  0x2e   :  { %870 = vmatpush1.bf16.msra.mxu1 %v1637_v21  ;;  %v1666_v50 = vld [vmem:[#allocation6 + $0x84] ss:$8 sps:$4 sm:$0xff]   ;;  %v1668_v52 = vld [vmem:[#allocation6 + $0x80] ss:$8 sps:$4 sm:$0xff]   ;;  %v1684_v58 = vld [vmem:[#allocation3 + $0x68] ss:$12 sps:$4 sm:$0xff]  }
  0x2f   :  { %709 = vmatpush1.bf16.msra.mxu0 %v1610_v14  ;;  %871 = vmatprep.subr.bf16.mxu1 %v1641_v22  ;;  %v1676_v51 = vld [vmem:[#allocation3 + $0x38] ss:$12 sps:$4 sm:$0xff]   ;;  %v1669_v53 = vld [vmem:[#allocation3] ss:$12 sps:$4 sm:$0xff]   ;;  %v1673_v54 = vld [vmem:[#allocation3 + $0x1c] ss:$12 sps:$4 sm:$0xff]  }
  0x30   :  { %710 = vmatprep.subr.bf16.mxu0 %v1611_v16  ;;  %v1680_v55 = vld [vmem:[#allocation3 + $0x50] ss:$12 sps:$4 sm:$0xff]   ;;  %v1675_v56 = vld [vmem:[#allocation3 + $0x18] ss:$12 sps:$4 sm:$0xff]   ;;  %v1677_v57 = vld [vmem:[#allocation3 + $0x34] ss:$12 sps:$4 sm:$0xff]  }
  0x31   :  { %v1679_v59 = vld [vmem:[#allocation3 + $0x30] ss:$12 sps:$4 sm:$0xff]   ;;  %v1681_v60 = vld [vmem:[#allocation3 + $0x4c] ss:$12 sps:$4 sm:$0xff]   ;;  %v1683_v62 = vld [vmem:[#allocation3 + $0x48] ss:$12 sps:$4 sm:$0xff]  }
  0x32   :  { %872 = vmatpush1.bf16.msra.mxu1 %v1643_v25  ;;  %v1688_v61 = vld [vmem:[#allocation3 + $0x80] ss:$12 sps:$4 sm:$0xff]   ;;  %v1685_v63 = vld [vmem:[#allocation3 + $0x64] ss:$12 sps:$4 sm:$0xff]   ;;  %v1689_v3 = vld [vmem:[#allocation3 + $0x7c] ss:$12 sps:$4 sm:$0xff]  }
  0x33   :  { %711 = vmatpush1.bf16.msra.mxu0 %v1613_v19  ;;  %873 = vmatprep.subr.bf16.mxu1 %v1647_v26  ;;  %v1692_v1 = vld [vmem:[#allocation3 + $0x98] ss:$12 sps:$4 sm:$0xff]   ;;  %v1687_v2 = vld [vmem:[#allocation3 + $0x60] ss:$12 sps:$4 sm:$0xff]   ;;  %v1696_v4 = vld [vmem:[#allocation3 + $0xb0] ss:$12 sps:$4 sm:$0xff]  }
  0x34   :  { %712 = vmatprep.subr.bf16.mxu0 %v1614_v20  ;;  %v1691_v5 = vld [vmem:[#allocation3 + $0x78] ss:$12 sps:$4 sm:$0xff]   ;;  %v1693_v6 = vld [vmem:[#allocation3 + $0x94] ss:$12 sps:$4 sm:$0xff]   ;;  %v1695_v8 = vld [vmem:[#allocation3 + $0x90] ss:$12 sps:$4 sm:$0xff]  }
  0x35   :  { %v1700_v7 = vld [vmem:[#allocation3 + $0xc8] ss:$12 sps:$4 sm:$0xff]   ;;  %v1697_v9 = vld [vmem:[#allocation3 + $0xac] ss:$12 sps:$4 sm:$0xff]   ;;  %v1701_v12 = vld [vmem:[#allocation3 + $0xc4] ss:$12 sps:$4 sm:$0xff]  }
  0x36   :  { %874 = vmatpush1.bf16.msra.mxu1 %v1649_v29  ;;  %v1704_v10 = vld [vmem:[#allocation3 + $0xe0] ss:$12 sps:$4 sm:$0xff]   ;;  %v1699_v11 = vld [vmem:[#allocation3 + $0xa8] ss:$12 sps:$4 sm:$0xff]   ;;  %v1708_v13 = vld [vmem:[#allocation3 + $0xf8] ss:$12 sps:$4 sm:$0xff]  }
  0x37   :  { %713 = vmatpush1.bf16.msra.mxu0 %v1616_v23  ;;  %875 = vmatprep.subr.bf16.mxu1 %v1653_v30  ;;  %v1703_v14 = vld [vmem:[#allocation3 + $0xc0] ss:$12 sps:$4 sm:$0xff]   ;;  %v1705_v15 = vld [vmem:[#allocation3 + $0xdc] ss:$12 sps:$4 sm:$0xff]   ;;  %v1707_v17 = vld [vmem:[#allocation3 + $0xd8] ss:$12 sps:$4 sm:$0xff]   ;;  %v1187_v30 = vlaneseq }
  0x38   :  { %714 = vmatprep.subr.bf16.mxu0 %v1620_v24  ;;  %v1712_v16 = vld [vmem:[#allocation3 + $0x110] ss:$12 sps:$4 sm:$0xff]   ;;  %v1709_v18 = vld [vmem:[#allocation3 + $0xf4] ss:$12 sps:$4 sm:$0xff]   ;;  %v1713_v21 = vld [vmem:[#allocation3 + $0x10c] ss:$12 sps:$4 sm:$0xff]  }
  0x39   :  { %v1716_v19 = vld [vmem:[#allocation3 + $0x128] ss:$12 sps:$4 sm:$0xff]   ;;  %v1711_v20 = vld [vmem:[#allocation3 + $0xf0] ss:$12 sps:$4 sm:$0xff]   ;;  %v1719_v24 = vld [vmem:[#allocation3 + $0x120] ss:$12 sps:$4 sm:$0xff]  }
  0x3a   :  { %876 = vmatpush1.bf16.msra.mxu1 %v1655_v33  ;;  %v1715_v22 = vld [vmem:[#allocation3 + $0x108] ss:$12 sps:$4 sm:$0xff]   ;;  %v1717_v23 = vld [vmem:[#allocation3 + $0x124] ss:$12 sps:$4 sm:$0xff]   ;;  %v1188_v33 = vshrl.u32 %v1187_v30, 7 }
  0x3b   :  { %715 = vmatpush1.bf16.msra.mxu0 %v1622_v27  ;;  %877 = vmatprep.subr.bf16.mxu1 %v1659_v34 }
  0x3c   :  { %716 = vmatprep.subr.bf16.mxu0 %v1626_v28 }
  0x3e   :  { %878 = vmatpush1.bf16.msra.mxu1 %v1661_v38  ;;  %v1185_v38 = vld [vmem:[%s1903_s2] sm:$0x3]  ;;  %s1793_s2 = smov [#allocation8]  }
  0x3f   :  { %717 = vmatpush2.bf16.msra.mxu0 %v1628_v31  ;;  %s1436_s26 = sshll.u32 %s1793_s2, 4  ;;  %s1437_s26 = int_to_ptr.vmem [resolvable:$true] %s1436_s26 }
  0x40   :  { %718 = vmatprep.subr.bf16.mxu0 %v1632_v32  ;;  %s1760_s27 = scalar_lea.vmem %s1437_s26, 3328  ;;  %p1765_p11 = scmp.lt.s32.totalorder %s1437_s26, %s1437_s26 }
  0x41   :  { %896 = vmatmul.mubr.bf16.vlgmr.msra.gmra.mxu1 %v1665_v41  ;;  %p1761_p10 = scmp.ne.s32.totalorder %s1437_s26, %s1760_s27  ;;  %p1766_p12 = scmp.lt.s32.totalorder %s1760_s27, %s1760_s27 }
  0x42   :  { %905 = vmatprep.mubr.bf16.mxu1 %v1792_v0 }
  0x43   :  { %719 = vmatpush2.bf16.msra.mxu0 %v1634_v36  ;;  %v1189_v36 = vsub.s32 0, %v1188_v33  ;;  %p1767_p13 = por %p1766_p12, %p1765_p11 }
  0x44   :  { %720 = vmatprep.subr.bf16.mxu0 %v1638_v37  ;;  %v1193_v37 = vsub.s32 1, %v1188_v33 }
  0x45   :  { %p1768_p0 = pnand %p1767_p13, %p1761_p10 }
  0x47   :  { %721 = vmatpush2.bf16.msra.mxu0 %v1640_v39 }
  0x48   :  { %722 = vmatprep.subr.bf16.mxu0 %v1644_v40 }
  0x49   :  { %906 = vmatmul.mubr.bf16.gmra.mxu1 %v1672_v46 }
  0x4a   :  { %915 = vmatprep.mubr.bf16.mxu1 %v1792_v0 }
  0x4b   :  { %723 = vmatpush2.bf16.msra.mxu0 %v1646_v42 }
  0x4c   :  { %724 = vmatprep.subr.bf16.mxu0 %v1650_v43  ;;  %v1839_v43 = vrot.slane %v1185_v38, %v1189_v36 }
  0x4f   :  { %725 = vmatpush2.bf16.msra.mxu0 %v1652_v44  ;;  %v1841_v44 = vrot.slane %v1185_v38, %v1193_v37 }
  0x50   :  { %726 = vmatprep.subr.bf16.mxu0 %v1656_v45 }
  0x51   :  { %916 = vmatmul.mubr.bf16.gmra.mxu1 %v1676_v51 }
  0x52   :  { %925 = vmatprep.mubr.bf16.mxu1 %v1792_v0 }
  0x53   :  { %727 = vmatpush2.bf16.msra.mxu0 %v1658_v47 }
  0x54   :  { %728 = vmatprep.subr.bf16.mxu0 %v1662_v48 }
  0x57   :  { %729 = vmatpush2.bf16.msra.mxu0 %v1664_v49 }
  0x58   :  { %730 = vmatprep.subr.bf16.mxu0 %v1666_v50 }
  0x59   :  { %926 = vmatmul.mubr.bf16.gmra.mxu1 %v1680_v55 }
  0x5a   :  { %935 = vmatprep.mubr.bf16.mxu1 %v1792_v0 }
  0x5b   :  { %731 = vmatpush2.bf16.msra.mxu0 %v1668_v52 }
  0x5e   :  { %733 = vmatmul.mubr.bf16.vlgmr.msra.gmra.mxu0 %v1669_v53 }
  0x5f   :  { %742 = vmatprep.mubr.bf16.mxu0 %v1673_v54 }
  0x61   :  { %936 = vmatmul.mubr.bf16.gmra.mxu1 %v1684_v58 }
  0x62   :  { %945 = vmatprep.mubr.bf16.mxu1 %v1792_v0 }
  0x66   :  { %743 = vmatmul.mubr.bf16.gmra.mxu0 %v1675_v56 }
  0x67   :  { %752 = vmatprep.mubr.bf16.mxu0 %v1677_v57 }
  0x69   :  { %946 = vmatmul.mubr.bf16.gmra.mxu1 %v1688_v61 }
  0x6a   :  { %955 = vmatprep.mubr.bf16.mxu1 %v1792_v0 }
  0x6e   :  { %753 = vmatmul.mubr.bf16.gmra.mxu0 %v1679_v59 }
  0x6f   :  { %762 = vmatprep.mubr.bf16.mxu0 %v1681_v60 }
  0x71   :  { %956 = vmatmul.mubr.bf16.gmra.mxu1 %v1692_v1 }
  0x72   :  { %965 = vmatprep.mubr.bf16.mxu1 %v1792_v0 }
  0x76   :  { %763 = vmatmul.mubr.bf16.gmra.mxu0 %v1683_v62 }
  0x77   :  { %772 = vmatprep.mubr.bf16.mxu0 %v1685_v63 }
  0x79   :  { %966 = vmatmul.mubr.bf16.gmra.mxu1 %v1696_v4 }
  0x7a   :  { %975 = vmatprep.mubr.bf16.mxu1 %v1792_v0 }
  0x7e   :  { %773 = vmatmul.mubr.bf16.gmra.mxu0 %v1687_v2 }
  0x7f   :  { %782 = vmatprep.mubr.bf16.mxu0 %v1689_v3 }
  0x81   :  { %976 = vmatmul.mubr.bf16.gmra.mxu1 %v1700_v7 }
  0x82   :  { %985 = vmatprep.mubr.bf16.mxu1 %v1792_v0 }
  0x86   :  { %783 = vmatmul.mubr.bf16.gmra.mxu0 %v1691_v5 }
  0x87   :  { %792 = vmatprep.mubr.bf16.mxu0 %v1693_v6 }
  0x89   :  { %986 = vmatmul.mubr.bf16.gmra.mxu1 %v1704_v10 }
  0x8a   :  { %995 = vmatprep.mubr.bf16.mxu1 %v1792_v0 }
  0x8e   :  { %793 = vmatmul.mubr.bf16.gmra.mxu0 %v1695_v8 }
  0x8f   :  { %802 = vmatprep.mubr.bf16.mxu0 %v1697_v9 }
  0x91   :  { %996 = vmatmul.mubr.bf16.gmra.mxu1 %v1708_v13 }
  0x92   :  { %1005 = vmatprep.mubr.bf16.mxu1 %v1792_v0 }
  0x96   :  { %803 = vmatmul.mubr.bf16.gmra.mxu0 %v1699_v11 }
  0x97   :  { %812 = vmatprep.mubr.bf16.mxu0 %v1701_v12 }
  0x99   :  { %1006 = vmatmul.mubr.bf16.gmra.mxu1 %v1712_v16 }
  0x9a   :  { %1015 = vmatprep.mubr.bf16.mxu1 %v1792_v0 }
  0x9e   :  { %813 = vmatmul.mubr.bf16.gmra.mxu0 %v1703_v14 }
  0x9f   :  { %822 = vmatprep.mubr.bf16.mxu0 %v1705_v15 }
  0xa1   :  { %1016 = vmatmul.mubr.bf16.gmra.mxu1 %v1716_v19 }
  0xa6   :  { %823 = vmatmul.mubr.bf16.gmra.mxu0 %v1707_v17 }
  0xa7   :  { %832 = vmatprep.mubr.bf16.mxu0 %v1709_v18 }
  0xae   :  { %833 = vmatmul.mubr.bf16.gmra.mxu0 %v1711_v20 }
  0xaf   :  { %842 = vmatprep.mubr.bf16.mxu0 %v1713_v21 }
  0xb6   :  { %843 = vmatmul.mubr.bf16.gmra.mxu0 %v1715_v22 }
  0xb7   :  { %852 = vmatprep.mubr.bf16.mxu0 %v1717_v23 }
  0xbe   :  { %853 = vmatmul.mubr.bf16.gmra.mxu0 %v1719_v24 }
 0x101   :  { %v897_v25 = vpop.f32.mrf.mxu1 }
 0x103   :  { %v899_v26 = vpop.f32.mrf.mxu1 }
 0x105   :  { %v901_v27 = vpop.f32.mrf.mxu1 }
 0x107   :  { %v903_v0 = vpop.f32.mrf.mxu1 }
 0x109   :  { %v907_v28 = vpop.f32.mrf.mxu1 }
 0x10b   :  { %v909_v29 = vpop.f32.mrf.mxu1 }
 0x10d   :  { %v911_v31 = vpop.f32.mrf.mxu1 }
 0x10f   :  { %v913_v32 = vpop.f32.mrf.mxu1 }
 0x111   :  { %v917_v34 = vpop.f32.mrf.mxu1 }
 0x113   :  { %v919_v35 = vpop.f32.mrf.mxu1 }
 0x115   :  { %v921_v39 = vpop.f32.mrf.mxu1 }
 0x117   :  { %v923_v41 = vpop.f32.mrf.mxu1 }
 0x119   :  { %v927_v46 = vpop.f32.mrf.mxu1 }
 0x11b   :  { %v929_v49 = vpop.f32.mrf.mxu1 }
 0x11d   :  { %v931_v54 = vpop.f32.mrf.mxu1 }
 0x11e   :  { %v734_v40 = vpop.f32.mrf.mxu0 }
 0x11f   :  { %v898_v42 = vadd.f32 %v897_v25, %v734_v40  ;;  %v933_v58 = vpop.f32.mrf.mxu1 }
 0x120   :  { %v736_v45 = vpop.f32.mrf.mxu0 }
 0x121   :  { %v900_v47 = vadd.f32 %v899_v26, %v736_v45  ;;  %v1197_v50 = vadd.f32 %v1839_v43, %v898_v42  ;;  %v937_v63 = vpop.f32.mrf.mxu1 }
 0x122   :  { %v738_v48 = vpop.f32.mrf.mxu0 }
 0x123   :  { %v1198_v51 = vadd.f32 %v1841_v44, %v900_v47  ;;  %v902_v52 = vadd.f32 %v901_v27, %v738_v48  ;;  %v939_v4 = vpop.f32.mrf.mxu1 }
 0x124   :  { %v740_v53 = vpop.f32.mrf.mxu0 }
 0x125   :  { %v1562_v55 = vpack.c.bf16 %v1198_v51, %v1197_v50  ;;  %v904_v56 = vadd.f32 %v903_v0, %v740_v53  ;;  %v1199_v59 = vadd.f32 %v1839_v43, %v902_v52  ;;  %v941_v9 = vpop.f32.mrf.mxu1 }
 0x126   :  { %v744_v57 = vpop.f32.mrf.mxu0 }
 0x127   :  { %1405 = vst [vmem:[#allocation8] sm:$0xff] %v1562_v55  ;;  %v1200_v60 = vadd.f32 %v1841_v44, %v904_v56  ;;  %v908_v61 = vadd.f32 %v907_v28, %v744_v57  ;;  %v943_v13 = vpop.f32.mrf.mxu1 }
 0x128   :  { %v746_v62 = vpop.f32.mrf.mxu0 }
 0x129   :  { %v1563_v1 = vpack.c.bf16 %v1200_v60, %v1199_v59  ;;  %v910_v2 = vadd.f32 %v909_v29, %v746_v62  ;;  %v1201_v5 = vadd.f32 %v1839_v43, %v908_v61  ;;  %v947_v18 = vpop.f32.mrf.mxu1 }
 0x12a   :  { %v748_v3 = vpop.f32.mrf.mxu0 }
 0x12b   :  { %1406 = vst [vmem:[#allocation8 + $0x8] sm:$0xff] %v1563_v1  ;;  %v1202_v6 = vadd.f32 %v1841_v44, %v910_v2  ;;  %v912_v7 = vadd.f32 %v911_v31, %v748_v3  ;;  %v949_v22 = vpop.f32.mrf.mxu1 }
 0x12c   :  { %v750_v8 = vpop.f32.mrf.mxu0 }
 0x12d   :  { %v1564_v10 = vpack.c.bf16 %v1202_v6, %v1201_v5  ;;  %v914_v11 = vadd.f32 %v913_v32, %v750_v8  ;;  %v1203_v14 = vadd.f32 %v1839_v43, %v912_v7  ;;  %v951_v27 = vpop.f32.mrf.mxu1 }
 0x12e   :  { %v754_v12 = vpop.f32.mrf.mxu0 }
 0x12f   :  { %1407 = vst [vmem:[#allocation8 + $0x10] sm:$0xff] %v1564_v10  ;;  %v1204_v15 = vadd.f32 %v1841_v44, %v914_v11  ;;  %v918_v16 = vadd.f32 %v917_v34, %v754_v12  ;;  %v953_v30 = vpop.f32.mrf.mxu1 }
 0x130   :  { %v756_v17 = vpop.f32.mrf.mxu0 }
 0x131   :  { %v1565_v19 = vpack.c.bf16 %v1204_v15, %v1203_v14  ;;  %v920_v20 = vadd.f32 %v919_v35, %v756_v17  ;;  %v1205_v23 = vadd.f32 %v1839_v43, %v918_v16  ;;  %v957_v35 = vpop.f32.mrf.mxu1 }
 0x132   :  { %v758_v21 = vpop.f32.mrf.mxu0 }
 0x133   :  { %1408 = vst [vmem:[#allocation8 + $0x18] sm:$0xff] %v1565_v19  ;;  %v1206_v24 = vadd.f32 %v1841_v44, %v920_v20  ;;  %v922_v25 = vadd.f32 %v921_v39, %v758_v21  ;;  %v959_v40 = vpop.f32.mrf.mxu1 }
 0x134   :  { %v760_v26 = vpop.f32.mrf.mxu0 }
 0x135   :  { %v1566_v0 = vpack.c.bf16 %v1206_v24, %v1205_v23  ;;  %v924_v28 = vadd.f32 %v923_v41, %v760_v26  ;;  %v1207_v31 = vadd.f32 %v1839_v43, %v922_v25  ;;  %v961_v47 = vpop.f32.mrf.mxu1 }
 0x136   :  { %v764_v29 = vpop.f32.mrf.mxu0 }
 0x137   :  { %1409 = vst [vmem:[#allocation8 + $0x20] sm:$0xff] %v1566_v0  ;;  %v1208_v32 = vadd.f32 %v1841_v44, %v924_v28  ;;  %v928_v33 = vadd.f32 %v927_v46, %v764_v29  ;;  %v963_v52 = vpop.f32.mrf.mxu1 }
 0x138   :  { %v766_v34 = vpop.f32.mrf.mxu0 }
 0x139   :  { %v1567_v36 = vpack.c.bf16 %v1208_v32, %v1207_v31  ;;  %v930_v37 = vadd.f32 %v929_v49, %v766_v34  ;;  %v1209_v39 = vadd.f32 %v1839_v43, %v928_v33  ;;  %v967_v56 = vpop.f32.mrf.mxu1 }
 0x13a   :  { %v768_v38 = vpop.f32.mrf.mxu0 }
 0x13b   :  { %1410 = vst [vmem:[#allocation8 + $0x28] sm:$0xff] %v1567_v36  ;;  %v1210_v42 = vadd.f32 %v1841_v44, %v930_v37  ;;  %v932_v41 = vadd.f32 %v931_v54, %v768_v38  ;;  %v969_v61 = vpop.f32.mrf.mxu1 }
 0x13c   :  { %v770_v45 = vpop.f32.mrf.mxu0 }
 0x13d   :  { %v1568_v48 = vpack.c.bf16 %v1210_v42, %v1209_v39  ;;  %v934_v50 = vadd.f32 %v933_v58, %v770_v45  ;;  %v1211_v46 = vadd.f32 %v1839_v43, %v932_v41  ;;  %v971_v2 = vpop.f32.mrf.mxu1 }
 0x13e   :  { %v774_v51 = vpop.f32.mrf.mxu0 }
 0x13f   :  { %1411 = vst [vmem:[#allocation8 + $0x30] sm:$0xff] %v1568_v48  ;;  %v1212_v53 = vadd.f32 %v1841_v44, %v934_v50  ;;  %v938_v49 = vadd.f32 %v937_v63, %v774_v51  ;;  %v973_v7 = vpop.f32.mrf.mxu1 }
 0x140   :  { %v776_v55 = vpop.f32.mrf.mxu0 }
 0x141   :  { %v1569_v57 = vpack.c.bf16 %v1212_v53, %v1211_v46  ;;  %v940_v59 = vadd.f32 %v939_v4, %v776_v55  ;;  %v1213_v54 = vadd.f32 %v1839_v43, %v938_v49  ;;  %v977_v11 = vpop.f32.mrf.mxu1 }
 0x142   :  { %v778_v60 = vpop.f32.mrf.mxu0 }
 0x143   :  { %1412 = vst [vmem:[#allocation8 + $0x38] sm:$0xff] %v1569_v57  ;;  %v1214_v62 = vadd.f32 %v1841_v44, %v940_v59  ;;  %v942_v58 = vadd.f32 %v941_v9, %v778_v60  ;;  %v979_v16 = vpop.f32.mrf.mxu1 }
 0x144   :  { %v780_v1 = vpop.f32.mrf.mxu0 }
 0x145   :  { %v1570_v3 = vpack.c.bf16 %v1214_v62, %v1213_v54  ;;  %v944_v5 = vadd.f32 %v943_v13, %v780_v1  ;;  %v1215_v63 = vadd.f32 %v1839_v43, %v942_v58  ;;  %v981_v20 = vpop.f32.mrf.mxu1 }
 0x146   :  { %v784_v6 = vpop.f32.mrf.mxu0 }
 0x147   :  { %1413 = vst [vmem:[#allocation8 + $0x40] sm:$0xff] %v1570_v3  ;;  %v1216_v8 = vadd.f32 %v1841_v44, %v944_v5  ;;  %v948_v4 = vadd.f32 %v947_v18, %v784_v6  ;;  %v983_v25 = vpop.f32.mrf.mxu1 }
 0x148   :  { %v786_v10 = vpop.f32.mrf.mxu0 }
 0x149   :  { %v1571_v12 = vpack.c.bf16 %v1216_v8, %v1215_v63  ;;  %v950_v14 = vadd.f32 %v949_v22, %v786_v10  ;;  %v1217_v9 = vadd.f32 %v1839_v43, %v948_v4  ;;  %v987_v28 = vpop.f32.mrf.mxu1 }
 0x14a   :  { %v788_v15 = vpop.f32.mrf.mxu0 }
 0x14b   :  { %1414 = vst [vmem:[#allocation8 + $0x48] sm:$0xff] %v1571_v12  ;;  %v1218_v17 = vadd.f32 %v1841_v44, %v950_v14  ;;  %v952_v13 = vadd.f32 %v951_v27, %v788_v15  ;;  %v989_v33 = vpop.f32.mrf.mxu1 }
 0x14c   :  { %v790_v19 = vpop.f32.mrf.mxu0 }
 0x14d   :  { %v1572_v21 = vpack.c.bf16 %v1218_v17, %v1217_v9  ;;  %v954_v23 = vadd.f32 %v953_v30, %v790_v19  ;;  %v1219_v18 = vadd.f32 %v1839_v43, %v952_v13  ;;  %v991_v37 = vpop.f32.mrf.mxu1 }
 0x14e   :  { %v794_v24 = vpop.f32.mrf.mxu0 }
 0x14f   :  { %1415 = vst [vmem:[#allocation8 + $0x50] sm:$0xff] %v1572_v21  ;;  %v1220_v26 = vadd.f32 %v1841_v44, %v954_v23  ;;  %v958_v22 = vadd.f32 %v957_v35, %v794_v24  ;;  %v993_v41 = vpop.f32.mrf.mxu1 }
 0x150   :  { %v796_v0 = vpop.f32.mrf.mxu0 }
 0x151   :  { %v1573_v29 = vpack.c.bf16 %v1220_v26, %v1219_v18  ;;  %v960_v31 = vadd.f32 %v959_v40, %v796_v0  ;;  %v1221_v27 = vadd.f32 %v1839_v43, %v958_v22  ;;  %v997_v50 = vpop.f32.mrf.mxu1 }
 0x152   :  { %v798_v32 = vpop.f32.mrf.mxu0 }
 0x153   :  { %1416 = vst [vmem:[#allocation8 + $0x58] sm:$0xff] %v1573_v29  ;;  %v1222_v34 = vadd.f32 %v1841_v44, %v960_v31  ;;  %v962_v30 = vadd.f32 %v961_v47, %v798_v32  ;;  %v999_v57 = vpop.f32.mrf.mxu1 }
 0x154   :  { %v800_v36 = vpop.f32.mrf.mxu0 }
 0x155   :  { %v1574_v38 = vpack.c.bf16 %v1222_v34, %v1221_v27  ;;  %v964_v39 = vadd.f32 %v963_v52, %v800_v36  ;;  %v1223_v35 = vadd.f32 %v1839_v43, %v962_v30 }
 0x156   :  { %v804_v42 = vpop.f32.mrf.mxu0 }
 0x157   :  { %1417 = vst [vmem:[#allocation8 + $0x60] sm:$0xff] %v1574_v38  ;;  %v1224_v45 = vadd.f32 %v1841_v44, %v964_v39  ;;  %v968_v40 = vadd.f32 %v967_v56, %v804_v42 }
 0x158   :  { %v806_v48 = vpop.f32.mrf.mxu0 }
 0x159   :  { %v1575_v51 = vpack.c.bf16 %v1224_v45, %v1223_v35  ;;  %v970_v46 = vadd.f32 %v969_v61, %v806_v48  ;;  %v1225_v47 = vadd.f32 %v1839_v43, %v968_v40  ;;  %v1001_v61 = vpop.f32.mrf.mxu1 }
 0x15a   :  { %v808_v53 = vpop.f32.mrf.mxu0 }
 0x15b   :  { %1418 = vst [vmem:[#allocation8 + $0x68] sm:$0xff] %v1575_v51  ;;  %v1226_v49 = vadd.f32 %v1841_v44, %v970_v46  ;;  %v972_v55 = vadd.f32 %v971_v2, %v808_v53 }
 0x15c   :  { %v810_v52 = vpop.f32.mrf.mxu0 }
 0x15d   :  { %v1576_v59 = vpack.c.bf16 %v1226_v49, %v1225_v47  ;;  %v974_v60 = vadd.f32 %v973_v7, %v810_v52  ;;  %v1227_v62 = vadd.f32 %v1839_v43, %v972_v55  ;;  %v1003_v7 = vpop.f32.mrf.mxu1 }
 0x15e   :  { %v814_v54 = vpop.f32.mrf.mxu0 }
 0x15f   :  { %1419 = vst [vmem:[#allocation8 + $0x70] sm:$0xff] %v1576_v59  ;;  %v1228_v56 = vadd.f32 %v1841_v44, %v974_v60  ;;  %v978_v58 = vadd.f32 %v977_v11, %v814_v54 }
 0x160   :  { %v816_v1 = vpop.f32.mrf.mxu0 }
 0x161   :  { %v1577_v3 = vpack.c.bf16 %v1228_v56, %v1227_v62  ;;  %v980_v5 = vadd.f32 %v979_v16, %v816_v1  ;;  %v1229_v63 = vadd.f32 %v1839_v43, %v978_v58  ;;  %v1007_v16 = vpop.f32.mrf.mxu1 }
 0x162   :  { %v818_v6 = vpop.f32.mrf.mxu0 }
 0x163   :  { %1420 = vst [vmem:[#allocation8 + $0x78] sm:$0xff] %v1577_v3  ;;  %v1230_v2 = vadd.f32 %v1841_v44, %v980_v5  ;;  %v982_v8 = vadd.f32 %v981_v20, %v818_v6 }
 0x164   :  { %v820_v4 = vpop.f32.mrf.mxu0 }
 0x165   :  { %v1578_v10 = vpack.c.bf16 %v1230_v2, %v1229_v63  ;;  %v984_v12 = vadd.f32 %v983_v25, %v820_v4  ;;  %v1231_v15 = vadd.f32 %v1839_v43, %v982_v8  ;;  %v1009_v25 = vpop.f32.mrf.mxu1 }
 0x166   :  { %v824_v14 = vpop.f32.mrf.mxu0 }
 0x167   :  { %1421 = vst [vmem:[#allocation8 + $0x80] sm:$0xff] %v1578_v10  ;;  %v1232_v11 = vadd.f32 %v1841_v44, %v984_v12  ;;  %v988_v9 = vadd.f32 %v987_v28, %v824_v14 }
 0x168   :  { %v826_v17 = vpop.f32.mrf.mxu0 }
 0x169   :  { %v1579_v13 = vpack.c.bf16 %v1232_v11, %v1231_v15  ;;  %v990_v19 = vadd.f32 %v989_v33, %v826_v17  ;;  %v1233_v23 = vadd.f32 %v1839_v43, %v988_v9  ;;  %v1011_v33 = vpop.f32.mrf.mxu1 }
 0x16a   :  { %v828_v21 = vpop.f32.mrf.mxu0 }
 0x16b   :  { %1422 = vst [vmem:[#allocation8 + $0x88] sm:$0xff] %v1579_v13  ;;  %v1234_v20 = vadd.f32 %v1841_v44, %v990_v19  ;;  %v992_v24 = vadd.f32 %v991_v37, %v828_v21  ;;  %v1013_v42 = vpop.f32.mrf.mxu1 }
 0x16c   :  { %v830_v18 = vpop.f32.mrf.mxu0 }
 0x16d   :  { %v1580_v26 = vpack.c.bf16 %v1234_v20, %v1233_v23  ;;  %v994_v22 = vadd.f32 %v993_v41, %v830_v18  ;;  %v1235_v29 = vadd.f32 %v1839_v43, %v992_v24  ;;  %v1017_v46 = vpop.f32.mrf.mxu1 }
 0x16e   :  { %v834_v0 = vpop.f32.mrf.mxu0 }
 0x16f   :  { %1423 = vst [vmem:[#allocation8 + $0x90] sm:$0xff] %v1580_v26  ;;  %v1236_v28 = vadd.f32 %v1841_v44, %v994_v22  ;;  %v998_v31 = vadd.f32 %v997_v50, %v834_v0  ;;  %v1019_v59 = vpop.f32.mrf.mxu1 }
 0x170   :  { %v836_v32 = vpop.f32.mrf.mxu0 }
 0x171   :  { %v1581_v27 = vpack.c.bf16 %v1236_v28, %v1235_v29  ;;  %v1000_v34 = vadd.f32 %v999_v57, %v836_v32  ;;  %v1237_v36 = vadd.f32 %v1839_v43, %v998_v31  ;;  %v1021_v3 = vpop.f32.mrf.mxu1 }
 0x172   :  { %v838_v30 = vpop.f32.mrf.mxu0 }
 0x173   :  { %1424 = vst [vmem:[#allocation8 + $0x98] sm:$0xff] %v1581_v27  ;;  %v1238_v37 = vadd.f32 %v1841_v44, %v1000_v34  ;;  %v1002_v38 = vadd.f32 %v1001_v61, %v838_v30  ;;  %v1023_v10 = vpop.f32.mrf.mxu1 }
 0x174   :  { %v840_v39 = vpop.f32.mrf.mxu0 }
 0x175   :  { %v1582_v41 = vpack.c.bf16 %v1238_v37, %v1237_v36  ;;  %v1004_v35 = vadd.f32 %v1003_v7, %v840_v39  ;;  %v1239_v40 = vadd.f32 %v1839_v43, %v1002_v38 }
 0x176   :  { %v844_v45 = vpop.f32.mrf.mxu0 }
 0x177   :  { %1425 = vst [vmem:[#allocation8 + $0xa0] sm:$0xff] %v1582_v41  ;;  %v1240_v48 = vadd.f32 %v1841_v44, %v1004_v35  ;;  %v1008_v50 = vadd.f32 %v1007_v16, %v844_v45 }
 0x178   :  { %v846_v51 = vpop.f32.mrf.mxu0 }
 0x179   :  { %v1583_v53 = vpack.c.bf16 %v1240_v48, %v1239_v40  ;;  %v1010_v47 = vadd.f32 %v1009_v25, %v846_v51  ;;  %v1241_v55 = vadd.f32 %v1839_v43, %v1008_v50 }
 0x17a   :  { %v848_v49 = vpop.f32.mrf.mxu0 }
 0x17b   :  { %1426 = vst [vmem:[#allocation8 + $0xa8] sm:$0xff] %v1583_v53  ;;  %v1242_v52 = vadd.f32 %v1841_v44, %v1010_v47  ;;  %v1012_v57 = vadd.f32 %v1011_v33, %v848_v49 }
 0x17c   :  { %v850_v60 = vpop.f32.mrf.mxu0 }
 0x17d   :  { %v1584_v54 = vpack.c.bf16 %v1242_v52, %v1241_v55  ;;  %v1014_v62 = vadd.f32 %v1013_v42, %v850_v60  ;;  %v1243_v58 = vadd.f32 %v1839_v43, %v1012_v57 }
 0x17e   :  { %v854_v56 = vpop.f32.mrf.mxu0 }
 0x17f   :  { %1427 = vst [vmem:[#allocation8 + $0xb0] sm:$0xff] %v1584_v54  ;;  %v1244_v1 = vadd.f32 %v1841_v44, %v1014_v62  ;;  %v1018_v61 = vadd.f32 %v1017_v46, %v854_v56 }
 0x180   :  { %v856_v5 = vpop.f32.mrf.mxu0 }
 0x181   :  { %v1585_v6 = vpack.c.bf16 %v1244_v1, %v1243_v58  ;;  %v1020_v63 = vadd.f32 %v1019_v59, %v856_v5  ;;  %v1245_v8 = vadd.f32 %v1839_v43, %v1018_v61 }
 0x182   :  { %v858_v2 = vpop.f32.mrf.mxu0 }
 0x183   :  { %1428 = vst [vmem:[#allocation8 + $0xb8] sm:$0xff] %v1585_v6  ;;  %v1246_v4 = vadd.f32 %v1841_v44, %v1020_v63  ;;  %v1022_v7 = vadd.f32 %v1021_v3, %v858_v2 }
 0x184   :  { %v860_v12 = vpop.f32.mrf.mxu0 }
 0x185   :  { %v1586_v14 = vpack.c.bf16 %v1246_v4, %v1245_v8  ;;  %v1024_v15 = vadd.f32 %v1023_v10, %v860_v12  ;;  %v1247_v11 = vadd.f32 %v1839_v43, %v1022_v7 }
 0x187   :  { %1429 = vst [vmem:[#allocation8 + $0xc0] sm:$0xff] %v1586_v14  ;;  %v1248_v9 = vadd.f32 %v1841_v44, %v1024_v15 }
 0x189   :  { %v1587_v17 = vpack.c.bf16 %v1248_v9, %v1247_v11 }
 0x18b   :  { %1430 = vst [vmem:[#allocation8 + $0xc8] sm:$0xff] %v1587_v17 }
 0x18c   :  { %1771 = shalt.err (!%p1768_p0)
}
 0x18d   :  { %1442 = dma.vmem_to_hbm [thread:$0]  %s1437_s26, 3328, %s1904_s3, [#allocation5], %s1790_s22, %s1790_s22, %s1791_s23  }
 0x18e   :  { %1784 = dma.done.wait [#allocation5], 3328  }
 0x18f   :  { %1785 = vsyncadd [#allocation5], 4294963968 }
 0x190   :  { %1446 = vsyncpa [#allocation4], 1 }
 0x191   :  { %1447 = vsyncpa [#allocation7], 1 }
 0x192   :  { %1448 = vsyncpa [#allocation5], 1 }

</bundles_post_ra>
